<compile_context>
chip_gen: v7x
topology: tpu7x:2x2x1
jax: 0.10.0
libtpu: 0.0.40
codegen_flags: <defaults>
</compile_context>

<pallas_src>
import math

import jax
import jax.numpy as jnp
from jax.experimental import pallas as pl
from jax.experimental.pallas import tpu as pltpu


def _round_up(v, m):
    return ((v + m - 1) // m) * m


# ---------------------------------------------------------------------------
# Pallas kernel: 2 fused matmuls + bias/ReLU; dueling combine pre-folded.
# ---------------------------------------------------------------------------
def _dueling_kernel(x_ref, w1_ref, b1_ref, w2_ref, b2_ref, out_ref):
    # In-kernel bf16 cast (VPU work, hidden under the MXU matmuls); x is f32
    # in HBM so no separate wrapper-side cast pass over it.
    xb = x_ref[...].astype(jnp.bfloat16)
    # Layer 1 (both branches fused): [Bt, in_pad] @ [in_pad, 2H_pad] -> f32.
    h = jnp.dot(xb, w1_ref[...], preferred_element_type=jnp.float32)
    h = jnp.maximum(h + b1_ref[...], 0.0)                      # f32 bias/ReLU
    # Layer 2 (dueling combine folded into W2/b2): -> lane-dense logits.
    out = jnp.dot(h.astype(w2_ref.dtype), w2_ref[...],
                  preferred_element_type=jnp.float32)
    out_ref[...] = out + b2_ref[...]                            # one full store


def dueling_dqn_forward(x, packed, *, output_dim, atoms, batch_tile=512):
    """x: [B, input_dim] float32 -> logits [B, output_dim, atoms] float32."""
    B, input_dim = x.shape
    w1, b1, w2, b2 = packed["w1"], packed["b1"], packed["w2"], packed["b2"]
    in_pad, h2_pad = w1.shape
    out_pad = w2.shape[1]
    out_cols = output_dim * atoms

    # Batch tile: sublane/MXU aligned; >=2 grid steps for large B so a second
    # TensorCore (v7x) actually gets work via dimension_semantics=("parallel",).
    if B <= 256:
        bt = max(16, _round_up(B, 8))
    else:
        bt = min(batch_tile, _round_up(pl.cdiv(B, 2), 256))
    B_pad = _round_up(B, bt)
    grid = (B_pad // bt,)

    # Zero-pad x (still f32) to the aligned tile; bf16 cast happens in-kernel.
    if (B_pad, in_pad) != (B, input_dim):
        x_p = jnp.zeros((B_pad, in_pad), jnp.float32).at[:B, :input_dim].set(x)
    else:
        x_p = x.astype(jnp.float32)

    flops = 2 * B_pad * (in_pad * h2_pad + h2_pad * out_pad)
    bytes_accessed = int(
        B_pad * in_pad * 4 + w1.size * 2 + w2.size * 2
        + b1.size * 4 + b2.size * 4 + B_pad * out_pad * 4)

    def make_call(single_buffer_weights):
        def const_spec(shape):
            if single_buffer_weights:
                return pl.BlockSpec(shape, lambda i: (0, 0),
                                    pipeline_mode=pl.Buffered(1))
            return pl.BlockSpec(shape, lambda i: (0, 0))

        wbuf = 1 if single_buffer_weights else 2
        weight_bytes = (w1.size + w2.size) * 2 + (b1.size + b2.size) * 4
        io_bytes = 2 * bt * (in_pad + out_pad) * 4          # double-buffered x/out
        vmem_limit = int(min(
            64 << 20,
            max(16 << 20, wbuf * weight_bytes + io_bytes + (8 << 20))))

        return pl.pallas_call(
            _dueling_kernel,
            out_shape=jax.ShapeDtypeStruct((B_pad, out_pad), jnp.float32),
            grid=grid,
            in_specs=[
                pl.BlockSpec((bt, in_pad), lambda i: (i, 0)),   # x tile (f32)
                const_spec((in_pad, h2_pad)),                   # W1 resident
                const_spec((1, h2_pad)),                        # b1 resident
                const_spec((h2_pad, out_pad)),                  # W2 resident
                const_spec((1, out_pad)),                       # b2 resident
            ],
            out_specs=pl.BlockSpec((bt, out_pad), lambda i: (i, 0)),
            compiler_params=pltpu.CompilerParams(
                dimension_semantics=("parallel",),
                vmem_limit_bytes=vmem_limit),
            cost_estimate=pl.CostEstimate(
                flops=flops, transcendentals=0, bytes_accessed=bytes_accessed),
        )

    try:
        out_flat = jax.block_until_ready(make_call(True)(x_p, w1, b1, w2, b2))
    except Exception:
        # Graceful fallback for JAX builds without BlockSpec pipeline_mode /
        # single-buffering support; math is identical.
        out_flat = make_call(False)(x_p, w1, b1, w2, b2)

    return out_flat[:B, :out_cols].reshape(B, output_dim, atoms)


# ---------------------------------------------------------------------------
# Deterministic NoisyLinear parameter construction (mu + sigma * eps folded).
# TODO(synk): PyTorch's NoisyLinear re-samples noise via reset_noise(); here the
# noise realization is fixed at parameter-build time (deterministic forward).
# ---------------------------------------------------------------------------
def _scale_noise(key, n):
    x = jax.random.normal(key, (n,), dtype=jnp.float32)
    return jnp.sign(x) * jnp.sqrt(jnp.abs(x))


def make_noisy_linear(key, in_features, out_features, sigma0=0.5):
    k_mu_w, k_mu_b, k_eps_in, k_eps_out = jax.random.split(key, 4)
    bound = 1.0 / math.sqrt(in_features)
    w_mu = jax.random.uniform(k_mu_w, (out_features, in_features),
                              minval=-bound, maxval=bound, dtype=jnp.float32)
    b_mu = jax.random.uniform(k_mu_b, (out_features,),
                              minval=-bound, maxval=bound, dtype=jnp.float32)
    w_sigma = jnp.full((out_features, in_features), sigma0 * bound, jnp.float32)
    b_sigma = jnp.full((out_features,), sigma0 * bound, jnp.float32)
    eps_in = _scale_noise(k_eps_in, in_features)
    eps_out = _scale_noise(k_eps_out, out_features)
    w_eff = w_mu + w_sigma * jnp.outer(eps_out, eps_in)   # [out, in]
    b_eff = b_mu + b_sigma * eps_out                      # [out]
    return w_eff.T, b_eff                                 # [in, out], [out]


def make_raw_params(key, input_dim, output_dim, hidden_size, atoms):
    k1, k2, k3, k4 = jax.random.split(key, 4)
    w1a, b1a = make_noisy_linear(k1, input_dim, hidden_size)
    w2a, b2a = make_noisy_linear(k2, hidden_size, output_dim * atoms)
    w1v, b1v = make_noisy_linear(k3, input_dim, hidden_size)
    w2v, b2v = make_noisy_linear(k4, hidden_size, atoms)
    return dict(w1a=w1a, b1a=b1a, w2a=w2a, b2a=b2a,
                w1v=w1v, b1v=b1v, w2v=w2v, b2v=b2v)


def pack_params(raw, *, output_dim, atoms):
    """Fuse branches, fold the dueling combine into W2/b2, pad to lane multiples."""
    A = output_dim
    n = A * atoms
    in_dim, hidden = raw["w1a"].shape
    h2 = 2 * hidden

    # out_adv = adv @ M where M = I - (1/A) * (ones_{AxA} (x) I_atoms)
    m = jnp.eye(n, dtype=jnp.float32) - (1.0 / A) * jnp.kron(
        jnp.ones((A, A), jnp.float32), jnp.eye(atoms, dtype=jnp.float32))
    # out_val = val @ T where T tiles I_atoms across the action dimension.
    t = jnp.tile(jnp.eye(atoms, dtype=jnp.float32), (1, A))   # [atoms, A*atoms]

    w2a_f = raw["w2a"] @ m          # [H, A*atoms]
    b2a_f = raw["b2a"] @ m          # [A*atoms]
    w2v_f = raw["w2v"] @ t          # [H, A*atoms]
    b2v_f = raw["b2v"] @ t          # [A*atoms]

    w1 = jnp.concatenate([raw["w1a"], raw["w1v"]], axis=1)   # [in, 2H]
    b1 = jnp.concatenate([raw["b1a"], raw["b1v"]])           # [2H]
    w2 = jnp.concatenate([w2a_f, w2v_f], axis=0)             # [2H, A*atoms]
    b2 = b2a_f + b2v_f                                       # [A*atoms]

    # Zero-pad every matmul dim to a multiple of 128 (done once, offline):
    # padded hidden columns get zero weight+bias -> relu(0)=0 -> contribute 0;
    # padded output columns are zero and sliced off in the wrapper.
    in_pad = _round_up(in_dim, 128)
    h2_pad = _round_up(h2, 128)
    out_pad = _round_up(n, 128)

    w1_p = jnp.zeros((in_pad, h2_pad), jnp.float32).at[:in_dim, :h2].set(w1)
    b1_p = jnp.zeros((1, h2_pad), jnp.float32).at[0, :h2].set(b1)
    w2_p = jnp.zeros((h2_pad, out_pad), jnp.float32).at[:h2, :n].set(w2)
    b2_p = jnp.zeros((1, out_pad), jnp.float32).at[0, :n].set(b2)

    # TODO(synk): W2 carries the folded mean-subtraction; if bf16 cancellation
    # error grows at production atom/action counts, keep w2 in f32 (it is
    # VMEM-resident either way).
    return dict(w1=w1_p.astype(jnp.bfloat16), b1=b1_p,
                w2=w2_p.astype(jnp.bfloat16), b2=b2_p)


# Pure-JAX reference mirroring the PyTorch forward (f32, unfused, unfolded).
def reference_forward(x, raw, *, output_dim, atoms):
    ha = jax.nn.relu(x @ raw["w1a"] + raw["b1a"])
    adv = (ha @ raw["w2a"] + raw["b2a"]).reshape(-1, output_dim, atoms)
    hv = jax.nn.relu(x @ raw["w1v"] + raw["b1v"])
    val = (hv @ raw["w2v"] + raw["b2v"])[:, None, :]
    return val + (adv - adv.mean(axis=1, keepdims=True))


if __name__ == "__main__":
    B, INPUT_DIM, HIDDEN, OUTPUT_DIM, ATOMS = 8, 32, 32, 4, 8

    key = jax.random.PRNGKey(0)
    kx, kp = jax.random.split(key)
    x = jax.random.normal(kx, (B, INPUT_DIM), dtype=jnp.float32)

    raw = make_raw_params(kp, INPUT_DIM, OUTPUT_DIM, HIDDEN, ATOMS)
    packed = pack_params(raw, output_dim=OUTPUT_DIM, atoms=ATOMS)

    logits = dueling_dqn_forward(x, packed, output_dim=OUTPUT_DIM, atoms=ATOMS)
    logits = jax.block_until_ready(logits)

    ref = reference_forward(x, raw, output_dim=OUTPUT_DIM, atoms=ATOMS)
    assert logits.shape == (B, OUTPUT_DIM, ATOMS)
    # bf16 matmul inputs with f32 accumulation -> loosened tolerance vs f32 ref.
    assert jnp.allclose(logits, ref, atol=5e-2, rtol=5e-2), (
        float(jnp.max(jnp.abs(logits - ref))))

    print("KERNEL_OK")
</pallas_src>

<mosaic_0001>
module attributes {stable_mosaic.version = 11 : i64} {
  func.func @_dueling_kernel(%arg0: i32, %arg1: memref<16x128xf32, #tpu.memory_space<vmem>>, %arg2: memref<128x128xbf16, #tpu.memory_space<vmem>>, %arg3: memref<1x128xf32, #tpu.memory_space<vmem>>, %arg4: memref<128x128xbf16, #tpu.memory_space<vmem>>, %arg5: memref<1x128xf32, #tpu.memory_space<vmem>>, %arg6: memref<16x128xf32, #tpu.memory_space<vmem>>) attributes {dimension_semantics = [#tpu.dimension_semantics<parallel>], iteration_bounds = array<i64: 1>, scalar_prefetch = 0 : i64, scratch_operands = 0 : i64, tpu.core_type = #tpu.core_type<tc>, window_params = [{transform_indices = @transform_0, window_bounds = array<i64: 16, 128>}, {pipeline_mode = #tpu.pipeline_mode<synchronous>, transform_indices = @transform_1, window_bounds = array<i64: 128, 128>}, {pipeline_mode = #tpu.pipeline_mode<synchronous>, transform_indices = @transform_2, window_bounds = array<i64: 1, 128>}, {pipeline_mode = #tpu.pipeline_mode<synchronous>, transform_indices = @transform_3, window_bounds = array<i64: 128, 128>}, {pipeline_mode = #tpu.pipeline_mode<synchronous>, transform_indices = @transform_4, window_bounds = array<i64: 1, 128>}, {transform_indices = @transform_5, window_bounds = array<i64: 16, 128>}]} {
    %c0 = arith.constant 0 : index
    %c0_0 = arith.constant 0 : index
    %0 = vector.load %arg1[%c0, %c0_0] : memref<16x128xf32, #tpu.memory_space<vmem>>, vector<16x128xf32>
    %1 = arith.truncf %0 : vector<16x128xf32> to vector<16x128xbf16>
    %c0_1 = arith.constant 0 : index
    %c0_2 = arith.constant 0 : index
    %2 = vector.load %arg2[%c0_1, %c0_2] : memref<128x128xbf16, #tpu.memory_space<vmem>>, vector<128x128xbf16>
    %cst = arith.constant dense<0.000000e+00> : vector<16x128xf32>
    %3 = tpu.matmul %1, %2, %cst {dimension_numbers = #tpu.dot_dimension_numbers<[1], [0], [0], [1], [0, 0, 1, 1], [], []>} : vector<16x128xbf16>, vector<128x128xbf16>, vector<16x128xf32> -> vector<16x128xf32>
    %c0_3 = arith.constant 0 : index
    %c0_4 = arith.constant 0 : index
    %4 = vector.load %arg3[%c0_3, %c0_4] : memref<1x128xf32, #tpu.memory_space<vmem>>, vector<1x128xf32>
    %5 = vector.broadcast %4 : vector<1x128xf32> to vector<16x128xf32>
    %6 = arith.addf %3, %5 : vector<16x128xf32>
    %cst_5 = arith.constant 0.000000e+00 : f32
    %7 = vector.broadcast %cst_5 : f32 to vector<16x128xf32>
    %8 = arith.maximumf %6, %7 : vector<16x128xf32>
    %9 = arith.truncf %8 : vector<16x128xf32> to vector<16x128xbf16>
    %c0_6 = arith.constant 0 : index
    %c0_7 = arith.constant 0 : index
    %10 = vector.load %arg4[%c0_6, %c0_7] : memref<128x128xbf16, #tpu.memory_space<vmem>>, vector<128x128xbf16>
    %cst_8 = arith.constant dense<0.000000e+00> : vector<16x128xf32>
    %11 = tpu.matmul %9, %10, %cst_8 {dimension_numbers = #tpu.dot_dimension_numbers<[1], [0], [0], [1], [0, 0, 1, 1], [], []>} : vector<16x128xbf16>, vector<128x128xbf16>, vector<16x128xf32> -> vector<16x128xf32>
    %c0_9 = arith.constant 0 : index
    %c0_10 = arith.constant 0 : index
    %12 = vector.load %arg5[%c0_9, %c0_10] : memref<1x128xf32, #tpu.memory_space<vmem>>, vector<1x128xf32>
    %13 = vector.broadcast %12 : vector<1x128xf32> to vector<16x128xf32>
    %14 = arith.addf %11, %13 : vector<16x128xf32>
    %c0_11 = arith.constant 0 : index
    %c0_12 = arith.constant 0 : index
    %15 = vector.load %arg6[%c0_11, %c0_12] : memref<16x128xf32, #tpu.memory_space<vmem>>, vector<16x128xf32>
    tpu.vector_store %arg6[%c0_11, %c0_12], %14 {strides = array<i32>} : memref<16x128xf32, #tpu.memory_space<vmem>>, vector<16x128xf32>,
    return
  }
  func.func @transform_0(%arg0: i32) -> (i32, i32) {
    %c0_i32 = arith.constant 0 : i32
    %c0_i32_0 = arith.constant 0 : i32
    return %arg0, %c0_i32 : i32, i32
  }
  func.func @transform_1(%arg0: i32) -> (i32, i32) {
    %c0_i32 = arith.constant 0 : i32
    %c0_i32_0 = arith.constant 0 : i32
    %c0_i32_1 = arith.constant 0 : i32
    return %c0_i32, %c0_i32_0 : i32, i32
  }
  func.func @transform_2(%arg0: i32) -> (i32, i32) {
    %c0_i32 = arith.constant 0 : i32
    %c0_i32_0 = arith.constant 0 : i32
    %c0_i32_1 = arith.constant 0 : i32
    return %c0_i32, %c0_i32_0 : i32, i32
  }
  func.func @transform_3(%arg0: i32) -> (i32, i32) {
    %c0_i32 = arith.constant 0 : i32
    %c0_i32_0 = arith.constant 0 : i32
    %c0_i32_1 = arith.constant 0 : i32
    return %c0_i32, %c0_i32_0 : i32, i32
  }
  func.func @transform_4(%arg0: i32) -> (i32, i32) {
    %c0_i32 = arith.constant 0 : i32
    %c0_i32_0 = arith.constant 0 : i32
    %c0_i32_1 = arith.constant 0 : i32
    return %c0_i32, %c0_i32_0 : i32, i32
  }
  func.func @transform_5(%arg0: i32) -> (i32, i32) {
    %c0_i32 = arith.constant 0 : i32
    %c0_i32_0 = arith.constant 0 : i32
    return %arg0, %c0_i32 : i32, i32
  }
}

module attributes {stable_mosaic.version = 11 : i64} {
  func.func @_dueling_kernel(%arg0: i32, %arg1: memref<16x128xf32, #tpu.memory_space<vmem>>, %arg2: memref<128x128xbf16, #tpu.memory_space<vmem>>, %arg3: memref<1x128xf32, #tpu.memory_space<vmem>>, %arg4: memref<128x128xbf16, #tpu.memory_space<vmem>>, %arg5: memref<1x128xf32, #tpu.memory_space<vmem>>, %arg6: memref<16x128xf32, #tpu.memory_space<vmem>>) attributes {dimension_semantics = [#tpu.dimension_semantics<parallel>], iteration_bounds = array<i64: 1>, scalar_prefetch = 0 : i64, scratch_operands = 0 : i64, tpu.core_type = #tpu.core_type<tc>, window_params = [{transform_indices = @transform_0, window_bounds = array<i64: 16, 128>}, {pipeline_mode = #tpu.pipeline_mode<synchronous>, transform_indices = @transform_1, window_bounds = array<i64: 128, 128>}, {pipeline_mode = #tpu.pipeline_mode<synchronous>, transform_indices = @transform_2, window_bounds = array<i64: 1, 128>}, {pipeline_mode = #tpu.pipeline_mode<synchronous>, transform_indices = @transform_3, window_bounds = array<i64: 128, 128>}, {pipeline_mode = #tpu.pipeline_mode<synchronous>, transform_indices = @transform_4, window_bounds = array<i64: 1, 128>}, {transform_indices = @transform_5, window_bounds = array<i64: 16, 128>}]} {
    %c0 = arith.constant 0 : index
    %c0_0 = arith.constant 0 : index
    %0 = vector.load %arg1[%c0, %c0_0] : memref<16x128xf32, #tpu.memory_space<vmem>>, vector<16x128xf32>
    %1 = arith.truncf %0 : vector<16x128xf32> to vector<16x128xbf16>
    %c0_1 = arith.constant 0 : index
    %c0_2 = arith.constant 0 : index
    %2 = vector.load %arg2[%c0_1, %c0_2] : memref<128x128xbf16, #tpu.memory_space<vmem>>, vector<128x128xbf16>
    %cst = arith.constant dense<0.000000e+00> : vector<16x128xf32>
    %3 = tpu.matmul %1, %2, %cst {dimension_numbers = #tpu.dot_dimension_numbers<[1], [0], [0], [1], [0, 0, 1, 1], [], []>} : vector<16x128xbf16>, vector<128x128xbf16>, vector<16x128xf32> -> vector<16x128xf32>
    %c0_3 = arith.constant 0 : index
    %c0_4 = arith.constant 0 : index
    %4 = vector.load %arg3[%c0_3, %c0_4] : memref<1x128xf32, #tpu.memory_space<vmem>>, vector<1x128xf32>
    %5 = vector.broadcast %4 : vector<1x128xf32> to vector<16x128xf32>
    %6 = arith.addf %3, %5 : vector<16x128xf32>
    %cst_5 = arith.constant 0.000000e+00 : f32
    %7 = vector.broadcast %cst_5 : f32 to vector<16x128xf32>
    %8 = arith.maximumf %6, %7 : vector<16x128xf32>
    %9 = arith.truncf %8 : vector<16x128xf32> to vector<16x128xbf16>
    %c0_6 = arith.constant 0 : index
    %c0_7 = arith.constant 0 : index
    %10 = vector.load %arg4[%c0_6, %c0_7] : memref<128x128xbf16, #tpu.memory_space<vmem>>, vector<128x128xbf16>
    %cst_8 = arith.constant dense<0.000000e+00> : vector<16x128xf32>
    %11 = tpu.matmul %9, %10, %cst_8 {dimension_numbers = #tpu.dot_dimension_numbers<[1], [0], [0], [1], [0, 0, 1, 1], [], []>} : vector<16x128xbf16>, vector<128x128xbf16>, vector<16x128xf32> -> vector<16x128xf32>
    %c0_9 = arith.constant 0 : index
    %c0_10 = arith.constant 0 : index
    %12 = vector.load %arg5[%c0_9, %c0_10] : memref<1x128xf32, #tpu.memory_space<vmem>>, vector<1x128xf32>
    %13 = vector.broadcast %12 : vector<1x128xf32> to vector<16x128xf32>
    %14 = arith.addf %11, %13 : vector<16x128xf32>
    %c0_11 = arith.constant 0 : index
    %c0_12 = arith.constant 0 : index
    %15 = vector.load %arg6[%c0_11, %c0_12] : memref<16x128xf32, #tpu.memory_space<vmem>>, vector<16x128xf32>
    tpu.vector_store %arg6[%c0_11, %c0_12], %14 {strides = array<i32>} : memref<16x128xf32, #tpu.memory_space<vmem>>, vector<16x128xf32>,
    return
  }
  func.func @transform_0(%arg0: i32) -> (i32, i32) {
    %c0_i32 = arith.constant 0 : i32
    %c0_i32_0 = arith.constant 0 : i32
    return %arg0, %c0_i32 : i32, i32
  }
  func.func @transform_1(%arg0: i32) -> (i32, i32) {
    %c0_i32 = arith.constant 0 : i32
    %c0_i32_0 = arith.constant 0 : i32
    %c0_i32_1 = arith.constant 0 : i32
    return %c0_i32, %c0_i32_0 : i32, i32
  }
  func.func @transform_2(%arg0: i32) -> (i32, i32) {
    %c0_i32 = arith.constant 0 : i32
    %c0_i32_0 = arith.constant 0 : i32
    %c0_i32_1 = arith.constant 0 : i32
    return %c0_i32, %c0_i32_0 : i32, i32
  }
  func.func @transform_3(%arg0: i32) -> (i32, i32) {
    %c0_i32 = arith.constant 0 : i32
    %c0_i32_0 = arith.constant 0 : i32
    %c0_i32_1 = arith.constant 0 : i32
    return %c0_i32, %c0_i32_0 : i32, i32
  }
  func.func @transform_4(%arg0: i32) -> (i32, i32) {
    %c0_i32 = arith.constant 0 : i32
    %c0_i32_0 = arith.constant 0 : i32
    %c0_i32_1 = arith.constant 0 : i32
    return %c0_i32, %c0_i32_0 : i32, i32
  }
  func.func @transform_5(%arg0: i32) -> (i32, i32) {
    %c0_i32 = arith.constant 0 : i32
    %c0_i32_0 = arith.constant 0 : i32
    return %arg0, %c0_i32 : i32, i32
  }
}

</mosaic_0001>

<bundles_post_ra>
// kernel: tpu_custom_call.1
= control target key start
LH: loop header
LB: loop body
LE: loop exit
PB: predicated region body
PF: predicated region fallthrough
CT: control target
= control target key end

     0   :  { %10 = vsyncpa [#allocation3], 0  ;;  %s615_s0 = inlined_call_operand.hbm [shape: f32[16,128], index: 0, kind: input, shape index: {}]   ;;  %s616_s1 = inlined_call_operand.hbm [shape: bf16[128,128], index: 1, kind: input, shape index: {}]   ;;  %s617_s2 = inlined_call_operand.vmem [shape: f32[1,128], index: 2, kind: input, shape index: {}]   ;;  %s618_s3 = inlined_call_operand.hbm [shape: bf16[128,128], index: 3, kind: input, shape index: {}]   ;;  %s619_s4 = inlined_call_operand.vmem [shape: f32[1,128], index: 4, kind: input, shape index: {}]   ;;  %s620_s5 = inlined_call_operand.hbm [shape: f32[16,128], index: 5, kind: output, shape index: {}]  }
   0x1   :  { %11 = vsyncpa [#allocation6], 0 }
   0x2   :  { %12 = vsyncpa [#allocation4], 0  ;;  %s509_s18 = smov [#allocation5]   ;;  %s415_s22 = scalar_lea.hbm %s616_s1, 1024 }
   0x3   :  { %s30_s19 = sshll.u32 %s509_s18, 4  ;;  %p416_p0 = scmp.ne.s32.totalorder %s616_s1, %s415_s22  ;;  %s31_s19 = int_to_ptr.vmem [resolvable:$true] %s30_s19 }
   0x4   :  { %p419_p1 = scmp.lt.u32.totalorder %s415_s22, %s616_s1 }
   0x6   :  { %p421_p2 = pnand %p419_p1, %p416_p0 }
   0x8   :  { %424 = shalt.err (!%p421_p2)
}
   0x9   :  { %s425_s27 = scalar_lea.vmem %s31_s19, 1024  ;;  %p430_p4 = scmp.lt.s32.totalorder %s31_s19, %s31_s19 }
   0xa   :  { %p426_p3 = scmp.ne.s32.totalorder %s31_s19, %s425_s27  ;;  %p431_p5 = scmp.lt.s32.totalorder %s425_s27, %s425_s27 }
   0xc   :  { %p432_p6 = por %p431_p5, %p430_p4 }
   0xe   :  { %p433_p7 = pnand %p432_p6, %p426_p3 }
  0x10   :  { %436 = shalt.err (!%p433_p7)
}
  0x11   :  { %s510_s28 = smov 64   ;;  %s511_s29 = smov 4  }
  0x12   :  { %36 = dma.hbm_to_vmem [thread:$0]  %s616_s1, 1024, %s31_s19, [#allocation6], %s510_s28, %s510_s28, %s511_s29  }
  0x13   :  { %s512_s7 = smov [#allocation2]   ;;  %s437_s11 = scalar_lea.hbm %s615_s0, 256 }
  0x14   :  { %s18_s8 = sshll.u32 %s512_s7, 4  ;;  %p438_p8 = scmp.ne.s32.totalorder %s615_s0, %s437_s11  ;;  %s19_s8 = int_to_ptr.vmem [resolvable:$true] %s18_s8 }
  0x15   :  { %p441_p9 = scmp.lt.u32.totalorder %s437_s11, %s615_s0 }
  0x17   :  { %p443_p10 = pnand %p441_p9, %p438_p8 }
  0x19   :  { %446 = shalt.err (!%p443_p10)
}
  0x1a   :  { %s447_s16 = scalar_lea.vmem %s19_s8, 256  ;;  %p452_p12 = scmp.lt.s32.totalorder %s19_s8, %s19_s8 }
  0x1b   :  { %p448_p11 = scmp.ne.s32.totalorder %s19_s8, %s447_s16  ;;  %p453_p13 = scmp.lt.s32.totalorder %s447_s16, %s447_s16 }
  0x1d   :  { %p454_p0 = por %p453_p13, %p452_p12 }
  0x1f   :  { %p455_p1 = pnand %p454_p0, %p448_p11 }
  0x21   :  { %458 = shalt.err (!%p455_p1)
}
  0x22   :  { %s513_s1 = smov 128   ;;  %s514_s17 = smov 8  }
  0x23   :  { %24 = dma.hbm_to_vmem [thread:$0]  %s615_s0, 256, %s19_s8, [#allocation3], %s513_s1, %s513_s1, %s514_s17  }
  0x24   :  { %s515_s20 = smov [#allocation7]   ;;  %s459_s24 = scalar_lea.hbm %s618_s3, 1024 }
  0x25   :  { %s44_s21 = sshll.u32 %s515_s20, 4  ;;  %p460_p2 = scmp.ne.s32.totalorder %s618_s3, %s459_s24  ;;  %s45_s21 = int_to_ptr.vmem [resolvable:$true] %s44_s21 }
  0x26   :  { %p463_p3 = scmp.lt.u32.totalorder %s459_s24, %s618_s3 }
  0x28   :  { %p465_p4 = pnand %p463_p3, %p460_p2 }
  0x2a   :  { %468 = shalt.err (!%p465_p4)
}
  0x2b   :  { %s469_s6 = scalar_lea.vmem %s45_s21, 1024  ;;  %p474_p6 = scmp.lt.s32.totalorder %s45_s21, %s45_s21 }
  0x2c   :  { %p470_p5 = scmp.ne.s32.totalorder %s45_s21, %s469_s6  ;;  %p475_p7 = scmp.lt.s32.totalorder %s469_s6, %s469_s6 }
  0x2e   :  { %p476_p8 = por %p475_p7, %p474_p6 }
  0x30   :  { %p477_p9 = pnand %p476_p8, %p470_p5 }
  0x32   :  { %480 = shalt.err (!%p477_p9)
}
  0x33   :  { %50 = dma.hbm_to_vmem [thread:$0]  %s618_s3, 1024, %s45_s21, [#allocation6], %s510_s28, %s510_s28, %s511_s29  }
  0x34   :  { %503 = dma.done.wait [#allocation3], 256  }
  0x35   :  { %504 = vsyncadd [#allocation3], 4294967040 }
  0x36   :  { %505 = dma.done.wait [#allocation6], 2048  }
  0x37   :  { %506 = vsyncadd [#allocation6], 4294965248  ;;  %v516_v0 = vmov 0.0   ;;  %vm517_vm0 = vmmov 0   ;;  %v399_v1 = vld [vmem:[#allocation5] sm:$0xff]   ;;  %v400_v2 = vld [vmem:[#allocation5 + $0x8] sm:$0xff]  }
  0x38   :  { %349 = vmatprep.subr.bf16.mxu0 %v516_v0  ;;  %365 = vmatprep.mubr.msk.bf16.mxu0 %vm517_vm0, %v516_v0  ;;  %v401_v3 = vld [vmem:[#allocation5 + $0x10] sm:$0xff]   ;;  %v407_v4 = vld [vmem:[#allocation7] sm:$0xff]   ;;  %v402_v5 = vld [vmem:[#allocation5 + $0x18] sm:$0xff]   ;;  %s518_s9 = smov [#allocation8]  }
  0x39   :  { %369 = vmatprep.subr.bf16.mxu1 %v516_v0  ;;  %385 = vmatprep.mubr.msk.bf16.mxu1 %vm517_vm0, %v516_v0  ;;  %v408_v6 = vld [vmem:[#allocation7 + $0x8] sm:$0xff]   ;;  %v403_v7 = vld [vmem:[#allocation5 + $0x20] sm:$0xff]   ;;  %v409_v8 = vld [vmem:[#allocation7 + $0x10] sm:$0xff]   ;;  %s300_s10 = sshll.u32 %s518_s9, 4  ;;  %s301_s10 = int_to_ptr.vmem [resolvable:$true] %s300_s10 }
  0x3a   :  { %350 = vmatpush3.bf16.msra.mxu0 %v399_v1  ;;  %370 = vmatpush3.bf16.msra.mxu1 %v407_v4  ;;  %v404_v9 = vld [vmem:[#allocation5 + $0x28] sm:$0xff]   ;;  %v410_v10 = vld [vmem:[#allocation7 + $0x18] sm:$0xff]   ;;  %v405_v11 = vld [vmem:[#allocation5 + $0x30] sm:$0xff]   ;;  %p486_p11 = scmp.lt.s32.totalorder %s301_s10, %s301_s10 }
  0x3b   :  { %351 = vmatprep.subr.bf16.mxu0 %v516_v0  ;;  %371 = vmatprep.subr.bf16.mxu1 %v516_v0  ;;  %v411_v12 = vld [vmem:[#allocation7 + $0x20] sm:$0xff]   ;;  %v406_v13 = vld [vmem:[#allocation5 + $0x38] sm:$0xff]   ;;  %v63_v14 = vld [vmem:[#allocation2] sm:$0xff] }
  0x3c   :  { %v64_v15 = vld [vmem:[#allocation2 + $0x8] sm:$0xff]  ;;  %v412_v16 = vld [vmem:[#allocation7 + $0x28] sm:$0xff]   ;;  %v413_v18 = vld [vmem:[#allocation7 + $0x30] sm:$0xff]  }
  0x3d   :  { %v65_v17 = vpack.c.bf16 %v64_v15, %v63_v14  ;;  %v414_v19 = vld [vmem:[#allocation7 + $0x38] sm:$0xff]   ;;  %v313_v20 = vld [vmem:[%s617_s2] ss:$0 sm:$0xff]  ;;  %s481_s2 = scalar_lea.vmem %s301_s10, 256 }
  0x3e   :  { %352 = vmatpush3.bf16.msra.mxu0 %v400_v2  ;;  %372 = vmatpush3.bf16.msra.mxu1 %v408_v6  ;;  %v322_v30 = vld [vmem:[%s619_s4] ss:$0 sm:$0xff]  ;;  %p482_p10 = scmp.ne.s32.totalorder %s301_s10, %s481_s2  ;;  %p487_p12 = scmp.lt.s32.totalorder %s481_s2, %s481_s2 }
  0x3f   :  { %353 = vmatprep.subr.bf16.mxu0 %v516_v0  ;;  %373 = vmatprep.subr.bf16.mxu1 %v516_v0 }
  0x40   :  { %p488_p13 = por %p487_p12, %p486_p11 }
  0x42   :  { %354 = vmatpush3.bf16.msra.mxu0 %v401_v3  ;;  %374 = vmatpush3.bf16.msra.mxu1 %v409_v8  ;;  %p489_p0 = pnand %p488_p13, %p482_p10 }
  0x43   :  { %355 = vmatprep.subr.bf16.mxu0 %v516_v0  ;;  %375 = vmatprep.subr.bf16.mxu1 %v516_v0 }
  0x46   :  { %356 = vmatpush3.bf16.msra.mxu0 %v402_v5  ;;  %376 = vmatpush3.bf16.msra.mxu1 %v410_v10 }
  0x47   :  { %357 = vmatprep.subr.bf16.mxu0 %v516_v0  ;;  %377 = vmatprep.subr.bf16.mxu1 %v516_v0 }
  0x4a   :  { %358 = vmatpush3.bf16.msra.mxu0 %v403_v7  ;;  %378 = vmatpush3.bf16.msra.mxu1 %v411_v12 }
  0x4b   :  { %359 = vmatprep.subr.bf16.mxu0 %v516_v0  ;;  %379 = vmatprep.subr.bf16.mxu1 %v516_v0 }
  0x4e   :  { %360 = vmatpush3.bf16.msra.mxu0 %v404_v9  ;;  %380 = vmatpush3.bf16.msra.mxu1 %v412_v16 }
  0x4f   :  { %361 = vmatprep.subr.bf16.mxu0 %v516_v0  ;;  %381 = vmatprep.subr.bf16.mxu1 %v516_v0 }
  0x52   :  { %362 = vmatpush3.bf16.msra.mxu0 %v405_v11  ;;  %382 = vmatpush3.bf16.msra.mxu1 %v413_v18 }
  0x53   :  { %363 = vmatprep.subr.bf16.mxu0 %v516_v0  ;;  %383 = vmatprep.subr.bf16.mxu1 %v516_v0 }
  0x56   :  { %364 = vmatpush3.bf16.msra.mxu0 %v406_v13  ;;  %384 = vmatpush3.bf16.msra.mxu1 %v414_v19 }
  0x59   :  { %366 = vmatmul.mubr.bf16.vlgmr.msra.gmra.mrb[0].mxu0 %v65_v17 }
 0x12c   :  { %v171_v21 = vpop.f32.mrb[0].mxu0 }
 0x12d   :  { %v172_v22 = vadd.f32 %v313_v20, %v171_v21  ;;  %v367_v23 = vpop.f32.mrb[1].mxu0 }
 0x12e   :  { %v174_v24 = vpop.f32.mrb[2].mxu0 }
 0x12f   :  { %v175_v25 = vadd.f32 %v313_v20, %v174_v24  ;;  %v368_v26 = vpop.f32.mrb[3].mxu0  ;;  %v178_v27 = vmax.f32 %v172_v22, 0.0 }
 0x131   :  { %v179_v28 = vmax.f32 %v175_v25, 0.0 }
 0x133   :  { %v180_v29 = vpack.c.bf16 %v179_v28, %v178_v27 }
 0x135   :  { %386 = vmatmul.mubr.bf16.vlgmr.msra.gmra.mrb[0].mxu1 %v180_v29 }
 0x208   :  { %v286_v31 = vpop.f32.mrb[0].mxu1 }
 0x209   :  { %v287_v32 = vadd.f32 %v322_v30, %v286_v31  ;;  %v387_v33 = vpop.f32.mrb[1].mxu1 }
 0x20a   :  { %v289_v34 = vpop.f32.mrb[2].mxu1 }
 0x20b   :  { %293 = vst [vmem:[#allocation8] sm:$0xff] %v287_v32  ;;  %v290_v35 = vadd.f32 %v322_v30, %v289_v34  ;;  %v388_v36 = vpop.f32.mrb[3].mxu1 }
 0x20d   :  { %294 = vst [vmem:[#allocation8 + $0x8] sm:$0xff] %v290_v35 }
 0x20e   :  { %492 = shalt.err (!%p489_p0)
}
 0x20f   :  { %s493_s12 = scalar_lea.hbm %s620_s5, 256 }
 0x210   :  { %p494_p1 = scmp.ne.s32.totalorder %s620_s5, %s493_s12  ;;  %p497_p2 = scmp.lt.u32.totalorder %s493_s12, %s620_s5 }
 0x212   :  { %p499_p3 = pnand %p497_p2, %p494_p1 }
 0x214   :  { %502 = shalt.err (!%p499_p3)
}
 0x215   :  { %306 = dma.vmem_to_hbm [thread:$0]  %s301_s10, 256, %s620_s5, [#allocation4], %s513_s1, %s513_s1, %s514_s17  }
 0x216   :  { %507 = dma.done.wait [#allocation4], 256  }
 0x217   :  { %508 = vsyncadd [#allocation4], 4294967040 }
 0x218   :  { %310 = vsyncpa [#allocation3], 1 }
 0x219   :  { %311 = vsyncpa [#allocation6], 1 }
 0x21a   :  { %312 = vsyncpa [#allocation4], 1 }

// kernel: tpu_custom_call.1
= control target key start
LH: loop header
LB: loop body
LE: loop exit
PB: predicated region body
PF: predicated region fallthrough
CT: control target
= control target key end

     0   :  { %10 = vsyncpa [#allocation3], 0  ;;  %s615_s0 = inlined_call_operand.hbm [shape: f32[16,128], index: 0, kind: input, shape index: {}]   ;;  %s616_s1 = inlined_call_operand.hbm [shape: bf16[128,128], index: 1, kind: input, shape index: {}]   ;;  %s617_s2 = inlined_call_operand.vmem [shape: f32[1,128], index: 2, kind: input, shape index: {}]   ;;  %s618_s3 = inlined_call_operand.hbm [shape: bf16[128,128], index: 3, kind: input, shape index: {}]   ;;  %s619_s4 = inlined_call_operand.vmem [shape: f32[1,128], index: 4, kind: input, shape index: {}]   ;;  %s620_s5 = inlined_call_operand.hbm [shape: f32[16,128], index: 5, kind: output, shape index: {}]  }
   0x1   :  { %11 = vsyncpa [#allocation6], 0 }
   0x2   :  { %12 = vsyncpa [#allocation4], 0  ;;  %s509_s18 = smov [#allocation5]   ;;  %s415_s22 = scalar_lea.hbm %s616_s1, 1024 }
   0x3   :  { %s30_s19 = sshll.u32 %s509_s18, 4  ;;  %p416_p0 = scmp.ne.s32.totalorder %s616_s1, %s415_s22  ;;  %s31_s19 = int_to_ptr.vmem [resolvable:$true] %s30_s19 }
   0x4   :  { %p419_p1 = scmp.lt.u32.totalorder %s415_s22, %s616_s1 }
   0x6   :  { %p421_p2 = pnand %p419_p1, %p416_p0 }
   0x8   :  { %424 = shalt.err (!%p421_p2)
}
   0x9   :  { %s425_s27 = scalar_lea.vmem %s31_s19, 1024  ;;  %p430_p4 = scmp.lt.s32.totalorder %s31_s19, %s31_s19 }
   0xa   :  { %p426_p3 = scmp.ne.s32.totalorder %s31_s19, %s425_s27  ;;  %p431_p5 = scmp.lt.s32.totalorder %s425_s27, %s425_s27 }
   0xc   :  { %p432_p6 = por %p431_p5, %p430_p4 }
   0xe   :  { %p433_p7 = pnand %p432_p6, %p426_p3 }
  0x10   :  { %436 = shalt.err (!%p433_p7)
}
  0x11   :  { %s510_s28 = smov 64   ;;  %s511_s29 = smov 4  }
  0x12   :  { %36 = dma.hbm_to_vmem [thread:$0]  %s616_s1, 1024, %s31_s19, [#allocation6], %s510_s28, %s510_s28, %s511_s29  }
  0x13   :  { %s512_s7 = smov [#allocation2]   ;;  %s437_s11 = scalar_lea.hbm %s615_s0, 256 }
  0x14   :  { %s18_s8 = sshll.u32 %s512_s7, 4  ;;  %p438_p8 = scmp.ne.s32.totalorder %s615_s0, %s437_s11  ;;  %s19_s8 = int_to_ptr.vmem [resolvable:$true] %s18_s8 }
  0x15   :  { %p441_p9 = scmp.lt.u32.totalorder %s437_s11, %s615_s0 }
  0x17   :  { %p443_p10 = pnand %p441_p9, %p438_p8 }
  0x19   :  { %446 = shalt.err (!%p443_p10)
}
  0x1a   :  { %s447_s16 = scalar_lea.vmem %s19_s8, 256  ;;  %p452_p12 = scmp.lt.s32.totalorder %s19_s8, %s19_s8 }
  0x1b   :  { %p448_p11 = scmp.ne.s32.totalorder %s19_s8, %s447_s16  ;;  %p453_p13 = scmp.lt.s32.totalorder %s447_s16, %s447_s16 }
  0x1d   :  { %p454_p0 = por %p453_p13, %p452_p12 }
  0x1f   :  { %p455_p1 = pnand %p454_p0, %p448_p11 }
  0x21   :  { %458 = shalt.err (!%p455_p1)
}
  0x22   :  { %s513_s1 = smov 128   ;;  %s514_s17 = smov 8  }
  0x23   :  { %24 = dma.hbm_to_vmem [thread:$0]  %s615_s0, 256, %s19_s8, [#allocation3], %s513_s1, %s513_s1, %s514_s17  }
  0x24   :  { %s515_s20 = smov [#allocation7]   ;;  %s459_s24 = scalar_lea.hbm %s618_s3, 1024 }
  0x25   :  { %s44_s21 = sshll.u32 %s515_s20, 4  ;;  %p460_p2 = scmp.ne.s32.totalorder %s618_s3, %s459_s24  ;;  %s45_s21 = int_to_ptr.vmem [resolvable:$true] %s44_s21 }
  0x26   :  { %p463_p3 = scmp.lt.u32.totalorder %s459_s24, %s618_s3 }
  0x28   :  { %p465_p4 = pnand %p463_p3, %p460_p2 }
  0x2a   :  { %468 = shalt.err (!%p465_p4)
}
  0x2b   :  { %s469_s6 = scalar_lea.vmem %s45_s21, 1024  ;;  %p474_p6 = scmp.lt.s32.totalorder %s45_s21, %s45_s21 }
  0x2c   :  { %p470_p5 = scmp.ne.s32.totalorder %s45_s21, %s469_s6  ;;  %p475_p7 = scmp.lt.s32.totalorder %s469_s6, %s469_s6 }
  0x2e   :  { %p476_p8 = por %p475_p7, %p474_p6 }
  0x30   :  { %p477_p9 = pnand %p476_p8, %p470_p5 }
  0x32   :  { %480 = shalt.err (!%p477_p9)
}
  0x33   :  { %50 = dma.hbm_to_vmem [thread:$0]  %s618_s3, 1024, %s45_s21, [#allocation6], %s510_s28, %s510_s28, %s511_s29  }
  0x34   :  { %503 = dma.done.wait [#allocation3], 256  }
  0x35   :  { %504 = vsyncadd [#allocation3], 4294967040 }
  0x36   :  { %505 = dma.done.wait [#allocation6], 2048  }
  0x37   :  { %506 = vsyncadd [#allocation6], 4294965248  ;;  %v516_v0 = vmov 0.0   ;;  %vm517_vm0 = vmmov 0   ;;  %v399_v1 = vld [vmem:[#allocation5] sm:$0xff]   ;;  %v400_v2 = vld [vmem:[#allocation5 + $0x8] sm:$0xff]  }
  0x38   :  { %349 = vmatprep.subr.bf16.mxu0 %v516_v0  ;;  %365 = vmatprep.mubr.msk.bf16.mxu0 %vm517_vm0, %v516_v0  ;;  %v401_v3 = vld [vmem:[#allocation5 + $0x10] sm:$0xff]   ;;  %v407_v4 = vld [vmem:[#allocation7] sm:$0xff]   ;;  %v402_v5 = vld [vmem:[#allocation5 + $0x18] sm:$0xff]   ;;  %s518_s9 = smov [#allocation8]  }
  0x39   :  { %369 = vmatprep.subr.bf16.mxu1 %v516_v0  ;;  %385 = vmatprep.mubr.msk.bf16.mxu1 %vm517_vm0, %v516_v0  ;;  %v408_v6 = vld [vmem:[#allocation7 + $0x8] sm:$0xff]   ;;  %v403_v7 = vld [vmem:[#allocation5 + $0x20] sm:$0xff]   ;;  %v409_v8 = vld [vmem:[#allocation7 + $0x10] sm:$0xff]   ;;  %s300_s10 = sshll.u32 %s518_s9, 4  ;;  %s301_s10 = int_to_ptr.vmem [resolvable:$true] %s300_s10 }
  0x3a   :  { %350 = vmatpush3.bf16.msra.mxu0 %v399_v1  ;;  %370 = vmatpush3.bf16.msra.mxu1 %v407_v4  ;;  %v404_v9 = vld [vmem:[#allocation5 + $0x28] sm:$0xff]   ;;  %v410_v10 = vld [vmem:[#allocation7 + $0x18] sm:$0xff]   ;;  %v405_v11 = vld [vmem:[#allocation5 + $0x30] sm:$0xff]   ;;  %p486_p11 = scmp.lt.s32.totalorder %s301_s10, %s301_s10 }
  0x3b   :  { %351 = vmatprep.subr.bf16.mxu0 %v516_v0  ;;  %371 = vmatprep.subr.bf16.mxu1 %v516_v0  ;;  %v411_v12 = vld [vmem:[#allocation7 + $0x20] sm:$0xff]   ;;  %v406_v13 = vld [vmem:[#allocation5 + $0x38] sm:$0xff]   ;;  %v63_v14 = vld [vmem:[#allocation2] sm:$0xff] }
  0x3c   :  { %v64_v15 = vld [vmem:[#allocation2 + $0x8] sm:$0xff]  ;;  %v412_v16 = vld [vmem:[#allocation7 + $0x28] sm:$0xff]   ;;  %v413_v18 = vld [vmem:[#allocation7 + $0x30] sm:$0xff]  }
  0x3d   :  { %v65_v17 = vpack.c.bf16 %v64_v15, %v63_v14  ;;  %v414_v19 = vld [vmem:[#allocation7 + $0x38] sm:$0xff]   ;;  %v313_v20 = vld [vmem:[%s617_s2] ss:$0 sm:$0xff]  ;;  %s481_s2 = scalar_lea.vmem %s301_s10, 256 }
  0x3e   :  { %352 = vmatpush3.bf16.msra.mxu0 %v400_v2  ;;  %372 = vmatpush3.bf16.msra.mxu1 %v408_v6  ;;  %v322_v30 = vld [vmem:[%s619_s4] ss:$0 sm:$0xff]  ;;  %p482_p10 = scmp.ne.s32.totalorder %s301_s10, %s481_s2  ;;  %p487_p12 = scmp.lt.s32.totalorder %s481_s2, %s481_s2 }
  0x3f   :  { %353 = vmatprep.subr.bf16.mxu0 %v516_v0  ;;  %373 = vmatprep.subr.bf16.mxu1 %v516_v0 }
  0x40   :  { %p488_p13 = por %p487_p12, %p486_p11 }
  0x42   :  { %354 = vmatpush3.bf16.msra.mxu0 %v401_v3  ;;  %374 = vmatpush3.bf16.msra.mxu1 %v409_v8  ;;  %p489_p0 = pnand %p488_p13, %p482_p10 }
  0x43   :  { %355 = vmatprep.subr.bf16.mxu0 %v516_v0  ;;  %375 = vmatprep.subr.bf16.mxu1 %v516_v0 }
  0x46   :  { %356 = vmatpush3.bf16.msra.mxu0 %v402_v5  ;;  %376 = vmatpush3.bf16.msra.mxu1 %v410_v10 }
  0x47   :  { %357 = vmatprep.subr.bf16.mxu0 %v516_v0  ;;  %377 = vmatprep.subr.bf16.mxu1 %v516_v0 }
  0x4a   :  { %358 = vmatpush3.bf16.msra.mxu0 %v403_v7  ;;  %378 = vmatpush3.bf16.msra.mxu1 %v411_v12 }
  0x4b   :  { %359 = vmatprep.subr.bf16.mxu0 %v516_v0  ;;  %379 = vmatprep.subr.bf16.mxu1 %v516_v0 }
  0x4e   :  { %360 = vmatpush3.bf16.msra.mxu0 %v404_v9  ;;  %380 = vmatpush3.bf16.msra.mxu1 %v412_v16 }
  0x4f   :  { %361 = vmatprep.subr.bf16.mxu0 %v516_v0  ;;  %381 = vmatprep.subr.bf16.mxu1 %v516_v0 }
  0x52   :  { %362 = vmatpush3.bf16.msra.mxu0 %v405_v11  ;;  %382 = vmatpush3.bf16.msra.mxu1 %v413_v18 }
  0x53   :  { %363 = vmatprep.subr.bf16.mxu0 %v516_v0  ;;  %383 = vmatprep.subr.bf16.mxu1 %v516_v0 }
  0x56   :  { %364 = vmatpush3.bf16.msra.mxu0 %v406_v13  ;;  %384 = vmatpush3.bf16.msra.mxu1 %v414_v19 }
  0x59   :  { %366 = vmatmul.mubr.bf16.vlgmr.msra.gmra.mrb[0].mxu0 %v65_v17 }
 0x12c   :  { %v171_v21 = vpop.f32.mrb[0].mxu0 }
 0x12d   :  { %v172_v22 = vadd.f32 %v313_v20, %v171_v21  ;;  %v367_v23 = vpop.f32.mrb[1].mxu0 }
 0x12e   :  { %v174_v24 = vpop.f32.mrb[2].mxu0 }
 0x12f   :  { %v175_v25 = vadd.f32 %v313_v20, %v174_v24  ;;  %v368_v26 = vpop.f32.mrb[3].mxu0  ;;  %v178_v27 = vmax.f32 %v172_v22, 0.0 }
 0x131   :  { %v179_v28 = vmax.f32 %v175_v25, 0.0 }
 0x133   :  { %v180_v29 = vpack.c.bf16 %v179_v28, %v178_v27 }
 0x135   :  { %386 = vmatmul.mubr.bf16.vlgmr.msra.gmra.mrb[0].mxu1 %v180_v29 }
 0x208   :  { %v286_v31 = vpop.f32.mrb[0].mxu1 }
 0x209   :  { %v287_v32 = vadd.f32 %v322_v30, %v286_v31  ;;  %v387_v33 = vpop.f32.mrb[1].mxu1 }
 0x20a   :  { %v289_v34 = vpop.f32.mrb[2].mxu1 }
 0x20b   :  { %293 = vst [vmem:[#allocation8] sm:$0xff] %v287_v32  ;;  %v290_v35 = vadd.f32 %v322_v30, %v289_v34  ;;  %v388_v36 = vpop.f32.mrb[3].mxu1 }
 0x20d   :  { %294 = vst [vmem:[#allocation8 + $0x8] sm:$0xff] %v290_v35 }
 0x20e   :  { %492 = shalt.err (!%p489_p0)
}
 0x20f   :  { %s493_s12 = scalar_lea.hbm %s620_s5, 256 }
 0x210   :  { %p494_p1 = scmp.ne.s32.totalorder %s620_s5, %s493_s12  ;;  %p497_p2 = scmp.lt.u32.totalorder %s493_s12, %s620_s5 }
 0x212   :  { %p499_p3 = pnand %p497_p2, %p494_p1 }
 0x214   :  { %502 = shalt.err (!%p499_p3)
}
 0x215   :  { %306 = dma.vmem_to_hbm [thread:$0]  %s301_s10, 256, %s620_s5, [#allocation4], %s513_s1, %s513_s1, %s514_s17  }
 0x216   :  { %507 = dma.done.wait [#allocation4], 256  }
 0x217   :  { %508 = vsyncadd [#allocation4], 4294967040 }
 0x218   :  { %310 = vsyncpa [#allocation3], 1 }
 0x219   :  { %311 = vsyncpa [#allocation6], 1 }
 0x21a   :  { %312 = vsyncpa [#allocation4], 1 }

</bundles_post_ra>
